<compile_context>
chip_gen: v7x
topology: tpu7x:2x2x1
jax: 0.10.0
libtpu: 0.0.40
codegen_flags: <defaults>
</compile_context>

<pallas_src>
import functools

import jax
import jax.numpy as jnp
from jax.experimental import pallas as pl
from jax.experimental.pallas import tpu as pltpu

_LANE = 128
_SUBLANE = 8


def _round_up(n, m):
    return ((n + m - 1) // m) * m


def _cdiv(a, b):
    return (a + b - 1) // b


def _vmem_capacity_bytes():
    try:
        return int(pltpu.get_tpu_info().vmem_capacity_bytes)
    except Exception:
        return 64 * 1024 * 1024  # conservative fallback (v7x per-TC VMEM)


def _pick_tk(d_hid_p, max_tk):
    """Largest multiple of 128 that divides d_hid_p and is <= max_tk."""
    if d_hid_p <= max_tk:
        return d_hid_p
    best = _LANE
    t = _LANE
    while t <= max_tk:
        if d_hid_p % t == 0:
            best = t
        t += _LANE
    return best


def _expert_kernel(x_ref, w1_ref, b1_ref, w2_ref, b2_ref, o_ref, acc_ref):
    """One (row-tile, hidden-chunk) grid step of Linear->ReLU->Linear."""
    k = pl.program_id(1)

    @pl.when(k == 0)
    def _init():
        acc_ref[...] = jnp.zeros_like(acc_ref)

    # First linear on this hidden chunk: (tm, d_in) @ (d_in, tk), bf16 MXU
    # operands, f32 accumulation.  x may arrive as f32 (unpadded fast path) or
    # bf16 (padded path); the cast is a cheap VPU op either way.
    x = x_ref[...].astype(jnp.bfloat16)
    h = jnp.dot(x, w1_ref[...], preferred_element_type=jnp.float32)
    # Bias + ReLU in f32; elementwise over the hidden dim, so chunking is exact.
    h = jnp.maximum(h + b1_ref[...], 0.0)
    # Second linear: accumulate this chunk's contribution into the f32 scratch.
    acc_ref[...] += jnp.dot(h.astype(jnp.bfloat16), w2_ref[...],
                            preferred_element_type=jnp.float32)

    @pl.when(k == pl.num_programs(1) - 1)
    def _finalize():
        o_ref[...] = (acc_ref[...] + b2_ref[...]).astype(o_ref.dtype)


def prepare_expert_params(w1, b1, w2, b2, *, max_tk=1024):
    """Pad feature dims to lane multiples, cast weights to bf16, pick the
    hidden-chunk size.  Do this once per expert, outside the per-call path."""
    d_in, d_hid = w1.shape
    d_hid2, d_out = w2.shape
    assert d_hid2 == d_hid and b1.shape == (d_hid,) and b2.shape == (d_out,)

    d_in_p = _round_up(d_in, _LANE)
    d_hid_p = _round_up(d_hid, _LANE)
    d_out_p = _round_up(d_out, _LANE)
    tk = _pick_tk(d_hid_p, max_tk)

    # Zero padding is exact: padded x columns hit zero W1 rows, padded hidden
    # columns give relu(0 + 0) = 0 and hit zero W2 rows, padded output
    # columns / rows are sliced off after the kernel.
    w1_p = jnp.pad(w1, ((0, d_in_p - d_in), (0, d_hid_p - d_hid))).astype(jnp.bfloat16)
    w2_p = jnp.pad(w2, ((0, d_hid_p - d_hid), (0, d_out_p - d_out))).astype(jnp.bfloat16)
    b1_p = jnp.pad(b1, (0, d_hid_p - d_hid)).astype(jnp.float32).reshape(1, d_hid_p)
    b2_p = jnp.pad(b2, (0, d_out_p - d_out)).astype(jnp.float32).reshape(1, d_out_p)

    dims = dict(d_in=d_in, d_hid=d_hid, d_out=d_out, tk=tk)
    return (w1_p, b1_p, w2_p, b2_p), dims


@functools.partial(jax.jit, static_argnames=("d_in", "d_out", "tk", "tm"))
def _expert_forward_padded(x, w1_p, b1_p, w2_p, b2_p, *, d_in, d_out, tk, tm):
    d_in_p, d_hid_p = w1_p.shape
    d_out_p = w2_p.shape[1]
    assert d_hid_p % tk == 0
    n_k = d_hid_p // tk

    out_dtype = x.dtype
    lead_shape = x.shape[:-1]
    x2d = x.reshape(-1, d_in)
    M = x2d.shape[0]

    # Balanced row tiles; force >= 2 tiles when possible (v7x megacore +
    # pipelining), and round each tile to a sublane multiple.
    n_m = _cdiv(M, tm)
    if M >= 2 * _SUBLANE:
        n_m = max(n_m, 2)
    tm_eff = _round_up(_cdiv(M, n_m), _SUBLANE)
    M_p = n_m * tm_eff

    pad_rows = M_p - M
    pad_cols = d_in_p - d_in
    if pad_rows or pad_cols:
        # Column zero-padding is required for correctness; row padding only
        # feeds output rows that are sliced off below.
        x_p = jnp.pad(x2d, ((0, pad_rows), (0, pad_cols))).astype(jnp.bfloat16)
    else:
        # Already aligned: stream x as-is, cast to bf16 inside the kernel.
        x_p = x2d

    x_itemsize = jnp.dtype(x_p.dtype).itemsize
    out_itemsize = jnp.dtype(out_dtype).itemsize

    # Single-buffer blocks whose index map is constant across the whole grid.
    resident = pl.Buffered(1)
    w_mode = resident if n_k == 1 else None  # stream (double-buffer) when K-tiled

    # VMEM budget estimate: streamed tiles double-buffered, resident blocks
    # single-buffered, plus f32 accumulator, live hidden chunk and slack.
    wbuf = 1 if n_k == 1 else 2
    vmem_needed = (
        2 * tm_eff * d_in_p * x_itemsize          # x tiles (double-buffered)
        + wbuf * d_in_p * tk * 2                  # W1 block(s), bf16
        + wbuf * tk * 4                           # b1 block(s), f32
        + wbuf * tk * d_out_p * 2                 # W2 block(s), bf16
        + d_out_p * 4                             # b2, single-buffered
        + 2 * tm_eff * d_out_p * out_itemsize     # out tiles
        + tm_eff * d_out_p * 4                    # f32 accumulator scratch
        + 2 * tm_eff * tk * 4                     # live f32 hidden + temporaries
        + 4 * 1024 * 1024                         # slack
    )
    # Cap below physical VMEM with headroom for Mosaic scratch / spills:
    # ~48 MiB usable on v7x (64 MiB/TC), ~112 MiB on v5e/v6e (128 MiB).
    vmem_cap = _vmem_capacity_bytes() - 16 * 1024 * 1024
    vmem_limit = int(min(max(vmem_needed, 32 * 1024 * 1024), vmem_cap))

    # Advisory cost estimate (weights re-streamed per row tile only if K-tiled).
    w_passes = n_m if n_k > 1 else 1
    cost = pl.CostEstimate(
        flops=int(2 * M_p * (d_in_p * d_hid_p + d_hid_p * d_out_p)),
        transcendentals=0,
        bytes_accessed=int(x_p.size * x_itemsize
                           + (w1_p.size + w2_p.size) * 2 * w_passes
                           + (b1_p.size + b2_p.size) * 4
                           + M_p * d_out_p * out_itemsize),
    )

    out = pl.pallas_call(
        _expert_kernel,
        out_shape=jax.ShapeDtypeStruct((M_p, d_out_p), out_dtype),
        grid=(n_m, n_k),
        in_specs=[
            pl.BlockSpec((tm_eff, d_in_p), lambda i, k: (i, 0)),                      # x tile
            pl.BlockSpec((d_in_p, tk), lambda i, k: (0, k), pipeline_mode=w_mode),    # W1 chunk
            pl.BlockSpec((1, tk), lambda i, k: (0, k), pipeline_mode=w_mode),         # b1 chunk
            pl.BlockSpec((tk, d_out_p), lambda i, k: (k, 0), pipeline_mode=w_mode),   # W2 chunk
            pl.BlockSpec((1, d_out_p), lambda i, k: (0, 0), pipeline_mode=resident),  # b2
        ],
        out_specs=pl.BlockSpec((tm_eff, d_out_p), lambda i, k: (i, 0)),
        scratch_shapes=[pltpu.VMEM((tm_eff, d_out_p), jnp.float32)],
        compiler_params=pltpu.CompilerParams(
            dimension_semantics=("parallel", "arbitrary"),
            vmem_limit_bytes=vmem_limit,
        ),
        cost_estimate=cost,
    )(x_p, w1_p, b1_p, w2_p, b2_p)

    if M_p != M or d_out_p != d_out:
        out = out[:M, :d_out]
    return out.reshape(*lead_shape, d_out)


def expert_forward(x, params, dims, *, tm=512):
    """x: (..., d_input) -> (..., d_output), matching nn.Sequential(Linear, ReLU, Linear)."""
    w1_p, b1_p, w2_p, b2_p = params
    return _expert_forward_padded(
        x, w1_p, b1_p, w2_p, b2_p,
        d_in=dims["d_in"], d_out=dims["d_out"], tk=dims["tk"], tm=tm)


def _reference_bf16(x, w1, b1, w2, b2):
    # Mirrors the kernel's numerics: bf16 matmul operands, f32 accumulation,
    # f32 bias/ReLU, bf16 re-cast of the hidden activations.
    f32 = jnp.float32
    xb = x.astype(jnp.bfloat16).astype(f32)
    w1b = w1.astype(jnp.bfloat16).astype(f32)
    w2b = w2.astype(jnp.bfloat16).astype(f32)
    h = jnp.maximum(xb @ w1b + b1.astype(f32), 0.0)
    h = h.astype(jnp.bfloat16).astype(f32)
    return (h @ w2b + b2.astype(f32)).astype(x.dtype)


if __name__ == "__main__":
    # Small shapes consistent with the module's forward: x of shape (batch, seq, d_input).
    batch, seq = 2, 8
    d_input, d_hidden, d_output = 32, 64, 32

    key = jax.random.PRNGKey(0)
    kx, kw1, kb1, kw2, kb2 = jax.random.split(key, 5)

    x = jax.random.normal(kx, (batch, seq, d_input), dtype=jnp.float32)

    # Deterministic parameter init (PyTorch-Linear-style uniform bounds),
    # stored pre-transposed relative to nn.Linear.weight.
    bound1 = 1.0 / (d_input ** 0.5)
    w1 = jax.random.uniform(kw1, (d_input, d_hidden), jnp.float32, -bound1, bound1)
    b1 = jax.random.uniform(kb1, (d_hidden,), jnp.float32, -bound1, bound1)
    bound2 = 1.0 / (d_hidden ** 0.5)
    w2 = jax.random.uniform(kw2, (d_hidden, d_output), jnp.float32, -bound2, bound2)
    b2 = jax.random.uniform(kb2, (d_output,), jnp.float32, -bound2, bound2)

    # Pad/cast weights once (outside the per-call path), then run the kernel.
    params, dims = prepare_expert_params(w1, b1, w2, b2)
    y = expert_forward(x, params, dims)
    jax.block_until_ready(y)

    y_ref = _reference_bf16(x, w1, b1, w2, b2)
    assert y.shape == (batch, seq, d_output)
    assert jnp.allclose(y, y_ref, atol=1e-2, rtol=1e-2), "mismatch vs JAX reference"

    print("KERNEL_OK")
</pallas_src>

<mosaic_0001>
module attributes {stable_mosaic.version = 11 : i64} {
  func.func @_expert_kernel(%arg0: i32, %arg1: i32, %arg2: memref<8x128xbf16, #tpu.memory_space<vmem>>, %arg3: memref<128x128xbf16, #tpu.memory_space<vmem>>, %arg4: memref<1x128xf32, #tpu.memory_space<vmem>>, %arg5: memref<128x128xbf16, #tpu.memory_space<vmem>>, %arg6: memref<1x128xf32, #tpu.memory_space<vmem>>, %arg7: memref<8x128xf32, #tpu.memory_space<vmem>>, %arg8: memref<8x128xf32, #tpu.memory_space<vmem>>) attributes {dimension_semantics = [#tpu.dimension_semantics<parallel>, #tpu.dimension_semantics<arbitrary>], iteration_bounds = array<i64: 2, 1>, scalar_prefetch = 0 : i64, scratch_operands = 1 : i64, tpu.core_type = #tpu.core_type<tc>, window_params = [{transform_indices = @transform_0, window_bounds = array<i64: 8, 128>}, {pipeline_mode = #tpu.pipeline_mode<synchronous>, transform_indices = @transform_1, window_bounds = array<i64: 128, 128>}, {pipeline_mode = #tpu.pipeline_mode<synchronous>, transform_indices = @transform_2, window_bounds = array<i64: 1, 128>}, {pipeline_mode = #tpu.pipeline_mode<synchronous>, transform_indices = @transform_3, window_bounds = array<i64: 128, 128>}, {pipeline_mode = #tpu.pipeline_mode<synchronous>, transform_indices = @transform_4, window_bounds = array<i64: 1, 128>}, {transform_indices = @transform_5, window_bounds = array<i64: 8, 128>}]} {
    %c0_i32 = arith.constant 0 : i32
    %0 = arith.cmpi eq, %arg1, %c0_i32 : i32
    %1 = arith.extui %0 : i1 to i32
    %c0_i32_0 = arith.constant 0 : i32
    %2 = arith.cmpi ne, %1, %c0_i32_0 : i32
    scf.if %2 {
      %cst_16 = arith.constant 0.000000e+00 : f32
      %20 = vector.broadcast %cst_16 : f32 to vector<8x128xf32>
      %c0_17 = arith.constant 0 : index
      %c0_18 = arith.constant 0 : index
      %21 = vector.load %arg8[%c0_17, %c0_18] : memref<8x128xf32, #tpu.memory_space<vmem>>, vector<8x128xf32>
      tpu.vector_store %arg8[%c0_17, %c0_18], %20 {strides = array<i32>} : memref<8x128xf32, #tpu.memory_space<vmem>>, vector<8x128xf32>,
    } else {
    }
    %c0 = arith.constant 0 : index
    %c0_1 = arith.constant 0 : index
    %3 = vector.load %arg2[%c0, %c0_1] : memref<8x128xbf16, #tpu.memory_space<vmem>>, vector<8x128xbf16>
    %c0_2 = arith.constant 0 : index
    %c0_3 = arith.constant 0 : index
    %4 = vector.load %arg3[%c0_2, %c0_3] : memref<128x128xbf16, #tpu.memory_space<vmem>>, vector<128x128xbf16>
    %cst = arith.constant dense<0.000000e+00> : vector<8x128xf32>
    %5 = tpu.matmul %3, %4, %cst {dimension_numbers = #tpu.dot_dimension_numbers<[1], [0], [0], [1], [0, 0, 1, 1], [], []>} : vector<8x128xbf16>, vector<128x128xbf16>, vector<8x128xf32> -> vector<8x128xf32>
    %c0_4 = arith.constant 0 : index
    %c0_5 = arith.constant 0 : index
    %6 = vector.load %arg4[%c0_4, %c0_5] : memref<1x128xf32, #tpu.memory_space<vmem>>, vector<1x128xf32>
    %7 = vector.broadcast %6 : vector<1x128xf32> to vector<8x128xf32>
    %8 = arith.addf %5, %7 : vector<8x128xf32>
    %cst_6 = arith.constant 0.000000e+00 : f32
    %9 = vector.broadcast %cst_6 : f32 to vector<8x128xf32>
    %10 = arith.maximumf %8, %9 : vector<8x128xf32>
    %c0_7 = arith.constant 0 : index
    %c0_8 = arith.constant 0 : index
    %11 = vector.load %arg8[%c0_7, %c0_8] : memref<8x128xf32, #tpu.memory_space<vmem>>, vector<8x128xf32>
    %12 = arith.truncf %10 : vector<8x128xf32> to vector<8x128xbf16>
    %c0_9 = arith.constant 0 : index
    %c0_10 = arith.constant 0 : index
    %13 = vector.load %arg5[%c0_9, %c0_10] : memref<128x128xbf16, #tpu.memory_space<vmem>>, vector<128x128xbf16>
    %cst_11 = arith.constant dense<0.000000e+00> : vector<8x128xf32>
    %14 = tpu.matmul %12, %13, %cst_11 {dimension_numbers = #tpu.dot_dimension_numbers<[1], [0], [0], [1], [0, 0, 1, 1], [], []>} : vector<8x128xbf16>, vector<128x128xbf16>, vector<8x128xf32> -> vector<8x128xf32>
    %15 = arith.addf %11, %14 : vector<8x128xf32>
    %c0_12 = arith.constant 0 : index
    %c0_13 = arith.constant 0 : index
    %16 = vector.load %arg8[%c0_12, %c0_13] : memref<8x128xf32, #tpu.memory_space<vmem>>, vector<8x128xf32>
    tpu.vector_store %arg8[%c0_12, %c0_13], %15 {strides = array<i32>} : memref<8x128xf32, #tpu.memory_space<vmem>>, vector<8x128xf32>,
    %c0_i32_14 = arith.constant 0 : i32
    %17 = arith.cmpi eq, %arg1, %c0_i32_14 : i32
    %18 = arith.extui %17 : i1 to i32
    %c0_i32_15 = arith.constant 0 : i32
    %19 = arith.cmpi ne, %18, %c0_i32_15 : i32
    scf.if %19 {
      %c0_16 = arith.constant 0 : index
      %c0_17 = arith.constant 0 : index
      %20 = vector.load %arg8[%c0_16, %c0_17] : memref<8x128xf32, #tpu.memory_space<vmem>>, vector<8x128xf32>
      %c0_18 = arith.constant 0 : index
      %c0_19 = arith.constant 0 : index
      %21 = vector.load %arg6[%c0_18, %c0_19] : memref<1x128xf32, #tpu.memory_space<vmem>>, vector<1x128xf32>
      %22 = vector.broadcast %21 : vector<1x128xf32> to vector<8x128xf32>
      %23 = arith.addf %20, %22 : vector<8x128xf32>
      %c0_20 = arith.constant 0 : index
      %c0_21 = arith.constant 0 : index
      %24 = vector.load %arg7[%c0_20, %c0_21] : memref<8x128xf32, #tpu.memory_space<vmem>>, vector<8x128xf32>
      tpu.vector_store %arg7[%c0_20, %c0_21], %23 {strides = array<i32>} : memref<8x128xf32, #tpu.memory_space<vmem>>, vector<8x128xf32>,
    } else {
    }
    return
  }
  func.func @transform_0(%arg0: i32, %arg1: i32) -> (i32, i32) {
    %c0_i32 = arith.constant 0 : i32
    %c0_i32_0 = arith.constant 0 : i32
    return %arg0, %c0_i32 : i32, i32
  }
  func.func @transform_1(%arg0: i32, %arg1: i32) -> (i32, i32) {
    %c0_i32 = arith.constant 0 : i32
    %c0_i32_0 = arith.constant 0 : i32
    return %c0_i32, %arg1 : i32, i32
  }
  func.func @transform_2(%arg0: i32, %arg1: i32) -> (i32, i32) {
    %c0_i32 = arith.constant 0 : i32
    %c0_i32_0 = arith.constant 0 : i32
    return %c0_i32, %arg1 : i32, i32
  }
  func.func @transform_3(%arg0: i32, %arg1: i32) -> (i32, i32) {
    %c0_i32 = arith.constant 0 : i32
    %c0_i32_0 = arith.constant 0 : i32
    return %arg1, %c0_i32 : i32, i32
  }
  func.func @transform_4(%arg0: i32, %arg1: i32) -> (i32, i32) {
    %c0_i32 = arith.constant 0 : i32
    %c0_i32_0 = arith.constant 0 : i32
    %c0_i32_1 = arith.constant 0 : i32
    return %c0_i32, %c0_i32_0 : i32, i32
  }
  func.func @transform_5(%arg0: i32, %arg1: i32) -> (i32, i32) {
    %c0_i32 = arith.constant 0 : i32
    %c0_i32_0 = arith.constant 0 : i32
    return %arg0, %c0_i32 : i32, i32
  }
}

</mosaic_0001>

<bundles_post_ra>
// kernel: _expert_forward_padded.1
= control target key start
LH: loop header
LB: loop body
LE: loop exit
PB: predicated region body
PF: predicated region fallthrough
CT: control target
= control target key end

     0   :  { %10 = vsyncpa [#allocation4], 0  ;;  %s1034_s0 = inlined_call_operand.vmem [shape: bf16[16,128], index: 0, kind: input, shape index: {}]   ;;  %s1035_s1 = inlined_call_operand.hbm [shape: bf16[128,128], index: 1, kind: input, shape index: {}]   ;;  %s1036_s2 = inlined_call_operand.vmem [shape: f32[1,128], index: 2, kind: input, shape index: {}]   ;;  %s1037_s3 = inlined_call_operand.hbm [shape: bf16[128,128], index: 3, kind: input, shape index: {}]   ;;  %s1038_s4 = inlined_call_operand.vmem [shape: f32[1,128], index: 4, kind: input, shape index: {}]   ;;  %s1039_s5 = inlined_call_operand.vmem [shape: f32[16,128], index: 5, kind: output, shape index: {}]  }
   0x1   :  { %11 = vsyncpa [#allocation6], 0  ;;  %s911_s18 = smov 0   ;;  %s913_s19 = smov 0  }
   0x2   :  { %s915_s20 = smov 0  }
   0x3 LB: > { %s632_s21 = sadd.s32 4294967295, %s873_s20   ;;  %s29_s22 = sadd.s32 1, %s869_s19  ;;  %s873_s20 = sphi %s915_s20, %s17_s20   ;;  %s869_s19 = sphi %s913_s19, %s1049_s19   ;;  %s865_s18 = sphi %s911_s18, %s1048_s18  }
   0x4   : > { %p31_p0 = scmp.ge.s32.totalorder %s29_s22, 2  ;;  %p634_p1 = scmp.ge.s32.totalorder %s873_s20, 1 }
   0x5   : > { %p185_p2 = scmp.lt.s32.totalorder %s873_s20, 3  ;;  %p936_p4 = scmp.eq.s32.totalorder %s632_s21, 0 }
   0x6   : > { %s1051_s22 = smov (%p31_p0, %s29_s22), 0  ;;  %s875_s25 = smov [#allocation3]  }
   0x7   : > { %p932_p3 = pnand %p634_p1, %p185_p2  ;;  %s199_s26 = sshll.u32 %s875_s25, 4  ;;  %s200_s26 = int_to_ptr.vmem [resolvable:$true] %s199_s26 }
   0x8   : > { %s1044_s24 = scalar_select %p936_p4, 1, 0 }
   0x9   : > { %s1043_s23 = scalar_select %p932_p3, 1, 0 }
   0xa   : > { %p730_p5 = pneg %p932_p3  ;;  %s876_s28 = smov [#allocation5]  }
   0xb   : > { %s221_s29 = sshll.u32 %s876_s28, 4  ;;  %s787_s7 = scalar_lea.hbm %s1035_s1, 1024  ;;  %s948_s29 = int_to_ptr.vmem [resolvable:$true] %s221_s29 }
   0xc   : > { %p944_p6 = pnand %p936_p4, %p730_p5  ;;  %p788_p7 = scmp.ne.s32.totalorder %s1035_s1, %s787_s7 }
   0xd   : > { %p794_p11 = scmp.lt.u32.totalorder %s787_s7, %s1035_s1 }
   0xe   : > { %p789_p8 = pneg %p944_p6 }
  0x10   : > { %p790_p9 = pnand %p789_p8, %p788_p7 }
  0x12   : > { %p791_p10 = pneg %p790_p9 }
  0x14   : > { %p796_p12 = pnand %p794_p11, %p791_p10 }
  0x16   : > { %799 = shalt.err (!%p796_p12)
}
  0x17   : > { %s800_s12 = scalar_lea.vmem %s200_s26, 1024  ;;  %p808_p2 = scmp.lt.s32.totalorder %s200_s26, %s200_s26 }
  0x18   : > { %p801_p13 = scmp.ne.s32.totalorder %s200_s26, %s800_s12  ;;  %p809_p5 = scmp.lt.s32.totalorder %s800_s12, %s800_s12 }
  0x1a   : > { %p803_p0 = pnand %p801_p13, %p789_p8  ;;  %p810_p4 = por %p809_p5, %p808_p2 }
  0x1c   : > { %p804_p1 = pneg %p803_p0 }
  0x1e   : > { %p811_p3 = pnand %p810_p4, %p804_p1 }
  0x20   : > { %814 = shalt.err (!%p811_p3)
}
  0x21   : > { %s877_s13 = smov 64   ;;  %s878_s14 = smov 4  }
  0x22   : > { %733 = dma.hbm_to_vmem [thread:$0]  (!%p944_p6), %s1035_s1, 1024, %s200_s26, [#allocation4], %s877_s13, %s877_s13, %s878_s14  }
  0x23   : > { %s815_s25 = scalar_lea.hbm %s1037_s3, 1024 }
  0x24   : > { %p816_p7 = scmp.ne.s32.totalorder %s1037_s3, %s815_s25  ;;  %p822_p9 = scmp.lt.u32.totalorder %s815_s25, %s1037_s3 }
  0x26   : > { %p818_p3 = pnand %p816_p7, %p789_p8 }
  0x28   : > { %p819_p4 = pneg %p818_p3 }
  0x2a   : > { %p824_p10 = pnand %p822_p9, %p819_p4 }
  0x2c   : > { %827 = shalt.err (!%p824_p10)
}
  0x2d   : > { %s828_s26 = scalar_lea.vmem %s948_s29, 1024  ;;  %p836_p0 = scmp.lt.s32.totalorder %s948_s29, %s948_s29 }
  0x2e   : > { %p829_p11 = scmp.ne.s32.totalorder %s948_s29, %s828_s26  ;;  %p837_p1 = scmp.lt.s32.totalorder %s828_s26, %s828_s26 }
  0x30   : > { %p831_p12 = pnand %p829_p11, %p789_p8  ;;  %p838_p2 = por %p837_p1, %p836_p0 }
  0x32   : > { %p832_p13 = pneg %p831_p12 }
  0x34   : > { %p839_p5 = pnand %p838_p2, %p832_p13 }
  0x36   : > { %842 = shalt.err (!%p839_p5)
}
  0x37   : > { %736 = dma.hbm_to_vmem [thread:$0]  (!%p944_p6), %s1037_s3, 1024, %s948_s29, [#allocation6], %s877_s13, %s877_s13, %s878_s14  }
  0x38   : > { %p1046_p7 = scmp.ne.s32.totalorder %s1043_s23, 0 }
  0x39   : > { %p1047_p3 = scmp.ne.s32.totalorder (!%p1046_p7), %s1044_s24, 0 }
  0x3a   : > { %247 = sbr.rel (%p1046_p7) target bundleno = 535 (0x217), region = 40 }
  0x41   : > { %856 = dma.done.wait (%p1047_p3), [#allocation4], 1024  }
  0x42   : > { %858 = vsyncadd (%p1047_p3), [#allocation4], 4294966272 }
  0x43   : > { %860 = dma.done.wait (%p1047_p3), [#allocation6], 1024  }
  0x44   : > { %862 = vsyncadd (%p1047_p3), [#allocation6], 4294966272  ;;  %v879_v0 = vmov 0.0   ;;  %vm880_vm0 = vmmov 0   ;;  %v771_v1 = vld [vmem:[#allocation3] sm:$0xff]   ;;  %v772_v2 = vld [vmem:[#allocation3 + $0x8] sm:$0xff]  }
  0x45   : > { %682 = vmatprep.subr.bf16.mxu0 %v879_v0  ;;  %698 = vmatprep.mubr.msk.bf16.mxu0 %vm880_vm0, %v879_v0  ;;  %v773_v3 = vld [vmem:[#allocation3 + $0x10] sm:$0xff]   ;;  %v779_v4 = vld [vmem:[#allocation5] sm:$0xff]   ;;  %v774_v5 = vld [vmem:[#allocation3 + $0x18] sm:$0xff]   ;;  %p280_p6 = scmp.lt.s32.totalorder %s865_s18, 1 }
  0x46   : > { %702 = vmatprep.subr.bf16.mxu1 %v879_v0  ;;  %718 = vmatprep.mubr.msk.bf16.mxu1 %vm880_vm0, %v879_v0  ;;  %v780_v6 = vld [vmem:[#allocation5 + $0x8] sm:$0xff]   ;;  %v775_v7 = vld [vmem:[#allocation3 + $0x20] sm:$0xff]   ;;  %v781_v8 = vld [vmem:[#allocation5 + $0x10] sm:$0xff]  }
  0x47   : > { %683 = vmatpush3.bf16.msra.mxu0 %v771_v1  ;;  %703 = vmatpush3.bf16.msra.mxu1 %v779_v4  ;;  %v776_v9 = vld [vmem:[#allocation3 + $0x28] sm:$0xff]   ;;  %v782_v10 = vld [vmem:[#allocation5 + $0x18] sm:$0xff]   ;;  %s1053_s18 = smov (!%p280_p6, %s865_s18), 1  ;;  %v777_v11 = vld [vmem:[#allocation3 + $0x30] sm:$0xff]  }
  0x48   : > { %684 = vmatprep.subr.bf16.mxu0 %v879_v0  ;;  %704 = vmatprep.subr.bf16.mxu1 %v879_v0  ;;  %v783_v12 = vld [vmem:[#allocation5 + $0x20] sm:$0xff]   ;;  %s642_s23 = sshll.u32 %s1053_s18, 2  ;;  %v778_v13 = vld [vmem:[#allocation3 + $0x38] sm:$0xff]   ;;  %v784_v14 = vld [vmem:[#allocation5 + $0x28] sm:$0xff]   ;;  %s643_s12 = sshll.u32 %s1053_s18, 3 }
  0x49   : > { %s283_s29 = scalar_lea.vmem %s1034_s0, %s642_s23  ;;  %v785_v16 = vld [vmem:[#allocation5 + $0x30] sm:$0xff]   ;;  %v786_v17 = vld [vmem:[#allocation5 + $0x38] sm:$0xff]   ;;  %v644_v18 = vld [vmem:[%s1036_s2] ss:$0 sm:$0xff]  ;;  %s291_s17 = scalar_lea.vmem %s1039_s5, %s643_s12 }
  0x4a   : > { %v298_v15 = vld [vmem:[%s283_s29] sm:$0xf] }
  0x4b   : > { %685 = vmatpush3.bf16.msra.mxu0 %v772_v2  ;;  %705 = vmatpush3.bf16.msra.mxu1 %v780_v6  ;;  %v661_v26 = vld [vmem:[%s1038_s4] ss:$0 sm:$0xff] }
  0x4c   : > { %686 = vmatprep.subr.bf16.mxu0 %v879_v0  ;;  %706 = vmatprep.subr.bf16.mxu1 %v879_v0 }
  0x4f   : > { %687 = vmatpush3.bf16.msra.mxu0 %v773_v3  ;;  %707 = vmatpush3.bf16.msra.mxu1 %v781_v8 }
  0x50   : > { %688 = vmatprep.subr.bf16.mxu0 %v879_v0  ;;  %708 = vmatprep.subr.bf16.mxu1 %v879_v0 }
  0x53   : > { %689 = vmatpush3.bf16.msra.mxu0 %v774_v5  ;;  %709 = vmatpush3.bf16.msra.mxu1 %v782_v10 }
  0x54   : > { %690 = vmatprep.subr.bf16.mxu0 %v879_v0  ;;  %710 = vmatprep.subr.bf16.mxu1 %v879_v0 }
  0x57   : > { %691 = vmatpush3.bf16.msra.mxu0 %v775_v7  ;;  %711 = vmatpush3.bf16.msra.mxu1 %v783_v12 }
  0x58   : > { %692 = vmatprep.subr.bf16.mxu0 %v879_v0  ;;  %712 = vmatprep.subr.bf16.mxu1 %v879_v0 }
  0x5b   : > { %693 = vmatpush3.bf16.msra.mxu0 %v776_v9  ;;  %713 = vmatpush3.bf16.msra.mxu1 %v784_v14 }
  0x5c   : > { %694 = vmatprep.subr.bf16.mxu0 %v879_v0  ;;  %714 = vmatprep.subr.bf16.mxu1 %v879_v0 }
  0x5f   : > { %695 = vmatpush3.bf16.msra.mxu0 %v777_v11  ;;  %715 = vmatpush3.bf16.msra.mxu1 %v785_v16 }
  0x60   : > { %696 = vmatprep.subr.bf16.mxu0 %v879_v0  ;;  %716 = vmatprep.subr.bf16.mxu1 %v879_v0 }
  0x63   : > { %697 = vmatpush3.bf16.msra.mxu0 %v778_v13  ;;  %717 = vmatpush3.bf16.msra.mxu1 %v786_v17 }
  0x66   : > { %699 = vmatmul.mubr.bf16.vlgmr.msra.gmra.mrb[0].mxu0 %v298_v15 }
 0x139   : > { %v404_v19 = vpop.f32.mrb[0].mxu0 }
 0x13a   : > { %v405_v20 = vadd.f32 %v644_v18, %v404_v19  ;;  %v700_v21 = vpop.f32.mrb[1].mxu0 }
 0x13b   : > { %v407_v22 = vpop.f32.mrb[2].mxu0 }
 0x13c   : > { %v410_v23 = vmax.f32 %v405_v20, 0.0  ;;  %v701_v24 = vpop.f32.mrb[3].mxu0 }
 0x13e   : > { %v412_v25 = vpack.c.bf16 %v410_v23, %v410_v23 }
 0x140   : > { %719 = vmatmul.mubr.bf16.vlgmr.msra.gmra.mrb[0].mxu1 %v412_v25 }
 0x213   : > { %v511_v27 = vpop.f32.mrb[0].mxu1 }
 0x214   : > { %v530_v28 = vadd.f32 %v661_v26, %v511_v27  ;;  %v720_v29 = vpop.f32.mrb[1].mxu1 }
 0x215   : > { %v514_v30 = vpop.f32.mrb[2].mxu1 }
 0x216   : > { %531 = vst [vmem:[%s291_s17] sm:$0xff] %v530_v28  ;;  %v721_v31 = vpop.f32.mrb[3].mxu1 }
 0x217 PF: > { %s17_s20 = sadd.s32 1, %s873_s20   ;;  %s1048_s18 = smov %s869_s19 }
 0x218   : > { %p14_p8 = scmp.ge.s32.totalorder %s17_s20, 4   ;;  %s1049_s19 = smov %s1051_s22 }
 0x21a   :  { %16 = sbr.rel (!%p14_p8) target bundleno = 3 (0x3), region = 92 }
 0x221   :  { %551 = vsyncpa [#allocation4], 1 }
 0x222   :  { %553 = vsyncpa [#allocation4 + $0x1], 1 }
 0x223   :  { %554 = vsyncpa [#allocation6], 1 }

</bundles_post_ra>
